<compile_context>
chip_gen: v7x
topology: tpu7x:2x2x1
jax: 0.10.0
libtpu: 0.0.40
codegen_flags: <defaults>
</compile_context>

<pallas_src>
import functools

import jax
import jax.numpy as jnp
from jax.experimental import pallas as pl
from jax.experimental.pallas import tpu as pltpu


def _round_up(x, m):
    return (x + m - 1) // m * m


def _vmem_capacity_bytes():
    try:
        return int(pltpu.get_tpu_info().vmem_capacity_bytes)
    except Exception:
        return 64 << 20  # safe lower bound (v7x per-TC VMEM)


def _chip_flags():
    try:
        kind = jax.devices()[0].device_kind.lower()
    except Exception:
        kind = ""
    is_v5e = ("v5e" in kind) or ("v5 lite" in kind) or ("v5litepod" in kind)
    bf16_vpu = not is_v5e                      # v6e/v7x have a native bf16 VPU
    multi_core = any(t in kind for t in ("v7", "v4", "v5p"))  # 2 TCs / chip
    return bf16_vpu, multi_core


def _layer_norm(z, g, beta, *, d_hid, eps, approx_recip):
    # Custom LayerNormalization: unbiased (N-1) std, eps added to sigma.
    mu = jnp.mean(z, axis=-1, keepdims=True)
    diff = z - mu
    var = jnp.sum(diff * diff, axis=-1, keepdims=True) / (d_hid - 1)
    sigma = jnp.sqrt(var)
    if approx_recip:
        out = diff * pl.reciprocal(sigma + eps, approx=True)   # EUP slot
    else:
        out = diff / (sigma + eps)                              # exact (f32 path)
    return out * g + beta


def _ffn_kernel_resident(x_ref, w1_ref, b1_ref, w2_ref, b2_ref, g_ref, beta_ref,
                         o_ref, *, d_hid, eps, apply_ln, h_dtype, approx_recip):
    x = x_ref[...].astype(jnp.float32)                          # (tm, d_hid)

    h = jnp.dot(x.astype(w1_ref.dtype), w1_ref[...],
                preferred_element_type=jnp.float32)             # (tm, d_inner)
    # bias + ReLU on the largest intermediate; bf16 on bf16-VPU chips.
    h = jnp.maximum(h.astype(h_dtype) + b1_ref[...].astype(h_dtype), 0.0)

    y = jnp.dot(h.astype(w2_ref.dtype), w2_ref[...],
                preferred_element_type=jnp.float32)             # (tm, d_hid)
    z = y + b2_ref[...] + x                                     # bias + residual

    if apply_ln:
        out = _layer_norm(z, g_ref[...], beta_ref[...], d_hid=d_hid, eps=eps,
                          approx_recip=approx_recip)
    else:
        out = z
    o_ref[...] = out.astype(o_ref.dtype)


def _ffn_kernel_ktiled(x_ref, w1_ref, b1_ref, w2_ref, b2_ref, g_ref, beta_ref,
                       o_ref, acc_ref, *, d_hid, eps, apply_ln, h_dtype,
                       approx_recip):
    k = pl.program_id(1)
    x = x_ref[...].astype(jnp.float32)

    @pl.when(k == 0)
    def _():
        acc_ref[...] = x + b2_ref[...]          # residual + output bias (once)

    h = jnp.dot(x.astype(w1_ref.dtype), w1_ref[...],
                preferred_element_type=jnp.float32)             # (tm, tk)
    h = jnp.maximum(h.astype(h_dtype) + b1_ref[...].astype(h_dtype), 0.0)
    acc_ref[...] += jnp.dot(h.astype(w2_ref.dtype), w2_ref[...],
                            preferred_element_type=jnp.float32)

    @pl.when(k == pl.num_programs(1) - 1)
    def _():
        z = acc_ref[...]
        if apply_ln:
            out = _layer_norm(z, g_ref[...], beta_ref[...], d_hid=d_hid,
                              eps=eps, approx_recip=approx_recip)
        else:
            out = z
        o_ref[...] = out.astype(o_ref.dtype)


def positionwise_feed_forward(x, w1, b1, w2, b2, a_2, b_2, *,
                              eps=0.001, tm=1024, matmul_dtype=jnp.bfloat16,
                              layer_norm=True, force_k_tiling=False,
                              tk_inner=None, out_dtype=None):
    """x: (B, L, d_hid). Returns (B, L, d_hid)."""
    B, L, d_hid = x.shape
    d_inner = w1.shape[1]
    out_dtype = x.dtype if out_dtype is None else out_dtype

    # LayerNormalization returns z unchanged when z.size(1) == 1 (L == 1).
    apply_ln = layer_norm and (L != 1)
    tokens = B * L

    bf16_vpu, multi_core = _chip_flags()
    w_bytes = jnp.dtype(matmul_dtype).itemsize
    h_dtype = matmul_dtype if (bf16_vpu and matmul_dtype != jnp.float32) \
        else jnp.float32
    h_bytes = jnp.dtype(h_dtype).itemsize
    approx_recip = (matmul_dtype != jnp.float32)   # exact divide on f32 check path

    vmem_cap = _vmem_capacity_bytes()
    vmem_budget = int(0.70 * vmem_cap)

    # ---- weight strategy: resident weights vs. K-tiled reduction ----------
    tk = d_inner
    resident_weight_bytes = 2 * d_hid * d_inner * w_bytes      # single-buffered
    use_k_tiling = force_k_tiling or (
        d_inner % 128 == 0 and resident_weight_bytes > vmem_budget // 2)

    if use_k_tiling:
        if tk_inner is not None:
            tk = int(tk_inner)
        else:
            cands = [c for c in (4096, 2048, 1024, 512, 256, 128)
                     if c <= d_inner and d_inner % c == 0]
            tk = d_inner
            for c in cands:
                if 2 * (2 * d_hid * c * w_bytes) <= vmem_budget // 2:
                    tk = c
                    break
        if d_inner % tk != 0 or (tk != d_inner and tk % 128 != 0):
            use_k_tiling = False                # cannot tile cleanly -> resident
            tk = d_inner

    # ---- VMEM footprint model & token-tile selection -----------------------
    def vmem_estimate(tm_):
        if use_k_tiling:
            weights = 2 * (2 * d_hid * tk) * w_bytes       # double-buffered tiles
            small = (2 * tk + 6 * d_hid) * 4 * 2
            interm = tm_ * tk * h_bytes + 3 * tm_ * d_hid * 4
            acc = tm_ * d_hid * 4
        else:
            weights = 2 * d_hid * d_inner * w_bytes        # resident, Buffered(1)
            small = (2 * d_inner + 6 * d_hid) * 4
            interm = tm_ * d_inner * h_bytes + 3 * tm_ * d_hid * 4
            acc = 0
        io = 2 * 2 * tm_ * d_hid * 4                       # x + out tiles, 2 bufs
        return weights + small + io + interm + acc

    tm = max(8, _round_up(min(tm, _round_up(tokens, 8)), 8))
    while tm > 8 and vmem_estimate(tm) > vmem_budget:
        tm = max(8, _round_up(tm // 2, 8))

    if multi_core:
        # Keep >= 4 grid steps on the "parallel" token axis so both TensorCores
        # (v7x / megacore) get work.
        tm = min(tm, max(8, _round_up(pl.cdiv(tokens, 4), 8)))

    tokens_p = _round_up(tokens, tm)
    grid_m = tokens_p // tm

    x2d = x.reshape(tokens, d_hid).astype(jnp.float32)
    if tokens_p != tokens:
        x2d = jnp.pad(x2d, ((0, tokens_p - tokens), (0, 0)))

    w1c = w1.astype(matmul_dtype)
    w2c = w2.astype(matmul_dtype)
    b1r = b1.reshape(1, d_inner).astype(jnp.float32)
    b2r = b2.reshape(1, d_hid).astype(jnp.float32)
    gr = a_2.reshape(1, d_hid).astype(jnp.float32)
    br = b_2.reshape(1, d_hid).astype(jnp.float32)

    est = vmem_estimate(tm)
    vmem_limit = int(min(int(0.90 * vmem_cap), max(2 * est, 32 << 20)))

    def build_and_run(single_buffer_consts):
        def const_spec(shape):
            # Constant-index operand: fetched once; single resident buffer.
            if single_buffer_consts:
                return pl.BlockSpec(shape, lambda *_: (0,) * len(shape),
                                    pipeline_mode=pl.Buffered(buffer_count=1))
            return pl.BlockSpec(shape, lambda *_: (0,) * len(shape))

        if use_k_tiling:
            grid = (grid_m, d_inner // tk)
            kernel = functools.partial(
                _ffn_kernel_ktiled, d_hid=d_hid, eps=eps, apply_ln=apply_ln,
                h_dtype=h_dtype, approx_recip=approx_recip)
            in_specs = [
                pl.BlockSpec((tm, d_hid), lambda i, k: (i, 0)),     # x tile
                pl.BlockSpec((d_hid, tk), lambda i, k: (0, k)),     # W1 k-tile
                pl.BlockSpec((1, tk), lambda i, k: (0, k)),         # b1 k-tile
                pl.BlockSpec((tk, d_hid), lambda i, k: (k, 0)),     # W2 k-tile
                const_spec((1, d_hid)),                             # b2
                const_spec((1, d_hid)),                             # gamma (a_2)
                const_spec((1, d_hid)),                             # beta  (b_2)
            ]
            out_specs = pl.BlockSpec((tm, d_hid), lambda i, k: (i, 0))
            scratch = (pltpu.VMEM((tm, d_hid), jnp.float32),)
            dims = ("parallel", "arbitrary")
        else:
            grid = (grid_m,)
            kernel = functools.partial(
                _ffn_kernel_resident, d_hid=d_hid, eps=eps, apply_ln=apply_ln,
                h_dtype=h_dtype, approx_recip=approx_recip)
            in_specs = [
                pl.BlockSpec((tm, d_hid), lambda i: (i, 0)),        # x tile
                const_spec((d_hid, d_inner)),                       # W1 (resident)
                const_spec((1, d_inner)),                           # b1
                const_spec((d_inner, d_hid)),                       # W2 (resident)
                const_spec((1, d_hid)),                             # b2
                const_spec((1, d_hid)),                             # gamma (a_2)
                const_spec((1, d_hid)),                             # beta  (b_2)
            ]
            out_specs = pl.BlockSpec((tm, d_hid), lambda i: (i, 0))
            scratch = ()
            dims = ("parallel",)

        return pl.pallas_call(
            kernel,
            out_shape=jax.ShapeDtypeStruct((tokens_p, d_hid), out_dtype),
            grid_spec=pltpu.PrefetchScalarGridSpec(
                num_scalar_prefetch=0,
                grid=grid,
                in_specs=in_specs,
                out_specs=out_specs,
                scratch_shapes=scratch,
            ),
            compiler_params=pltpu.CompilerParams(
                dimension_semantics=dims,
                vmem_limit_bytes=vmem_limit,
            ),
        )(x2d, w1c, b1r, w2c, b2r, gr, br)

    try:
        out2d = build_and_run(True)
    except Exception:
        # pl.Buffered(1) hint not supported by this jax build -> default pipelining.
        out2d = build_and_run(False)

    if tokens_p != tokens:
        out2d = out2d[:tokens]
    return out2d.reshape(B, L, d_hid)


def _reference(x, w1, b1, w2, b2, a_2, b_2, eps=0.001):
    """Pure-JAX reference mirroring the PyTorch forward (eval mode)."""
    h = jnp.maximum(jnp.einsum("bld,di->bli", x, w1) + b1, 0.0)
    y = jnp.einsum("bli,id->bld", h, w2) + b2
    z = y + x
    if x.shape[1] == 1:            # LayerNormalization skips when size(1) == 1
        return z
    mu = jnp.mean(z, axis=-1, keepdims=True)
    sigma = jnp.std(z, axis=-1, keepdims=True, ddof=1)   # torch.std is unbiased
    return (z - mu) / (sigma + eps) * a_2 + b_2


def _make_params(key, d_hid, d_inner, B, L):
    kx, k1, k2, kb1, kb2 = jax.random.split(key, 5)
    x = jax.random.normal(kx, (B, L, d_hid), dtype=jnp.float32)
    # Conv1d(d_hid, d_inner, 1).weight has shape (d_inner, d_hid, 1); we store
    # its transpose so the kernel does x @ W1 directly.
    w1 = jax.random.normal(k1, (d_hid, d_inner), dtype=jnp.float32) * 0.1
    b1 = jax.random.normal(kb1, (d_inner,), dtype=jnp.float32) * 0.1
    w2 = jax.random.normal(k2, (d_inner, d_hid), dtype=jnp.float32) * 0.1
    b2 = jax.random.normal(kb2, (d_hid,), dtype=jnp.float32) * 0.1
    a_2 = jnp.ones((d_hid,), dtype=jnp.float32)
    b_2 = jnp.zeros((d_hid,), dtype=jnp.float32)
    return x, w1, b1, w2, b2, a_2, b_2


if __name__ == "__main__":
    key = jax.random.PRNGKey(0)
    k_a, k_b, k_c = jax.random.split(key, 3)

    # --- Config A: small demo, resident-weight path --------------------------
    B, L, d_hid, d_inner = 2, 8, 32, 64
    args = _make_params(k_a, d_hid, d_inner, B, L)
    ref = _reference(*args)

    out_f32 = jax.block_until_ready(
        positionwise_feed_forward(*args, matmul_dtype=jnp.float32))
    assert out_f32.shape == (B, L, d_hid)
    assert jnp.allclose(out_f32, ref, atol=5e-3, rtol=5e-3), float(
        jnp.max(jnp.abs(out_f32 - ref)))

    out_bf16 = jax.block_until_ready(positionwise_feed_forward(*args))
    assert out_bf16.shape == (B, L, d_hid)
    assert jnp.allclose(out_bf16, ref, atol=5e-2, rtol=5e-2), float(
        jnp.max(jnp.abs(out_bf16 - ref)))

    # --- Config B: L == 1 -> LayerNormalization is skipped --------------------
    B1, L1 = 2, 1
    args1 = _make_params(k_b, d_hid, d_inner, B1, L1)
    ref1 = _reference(*args1)
    out1 = jax.block_until_ready(
        positionwise_feed_forward(*args1, matmul_dtype=jnp.float32))
    assert out1.shape == (B1, L1, d_hid)
    assert jnp.allclose(out1, ref1, atol=5e-3, rtol=5e-3), float(
        jnp.max(jnp.abs(out1 - ref1)))

    # --- Config C: K-tiled reduction path (forced, small shapes) --------------
    Bk, Lk, d_hid_k, d_inner_k = 2, 16, 128, 256
    argsk = _make_params(k_c, d_hid_k, d_inner_k, Bk, Lk)
    refk = _reference(*argsk)

    outk_f32 = jax.block_until_ready(
        positionwise_feed_forward(*argsk, matmul_dtype=jnp.float32,
                                  force_k_tiling=True, tk_inner=128))
    assert outk_f32.shape == (Bk, Lk, d_hid_k)
    assert jnp.allclose(outk_f32, refk, atol=5e-3, rtol=5e-3), float(
        jnp.max(jnp.abs(outk_f32 - refk)))

    outk_bf16 = jax.block_until_ready(
        positionwise_feed_forward(*argsk, force_k_tiling=True, tk_inner=128))
    assert outk_bf16.shape == (Bk, Lk, d_hid_k)
    assert jnp.allclose(outk_bf16, refk, atol=5e-2, rtol=5e-2), float(
        jnp.max(jnp.abs(outk_bf16 - refk)))

    print("KERNEL_OK")
</pallas_src>

<mosaic_0001>
module attributes {stable_mosaic.version = 11 : i64} {
  func.func @_ffn_kernel_resident(%arg0: i32, %arg1: memref<16x32xf32, #tpu.memory_space<vmem>>, %arg2: memref<32x64xf32, #tpu.memory_space<vmem>>, %arg3: memref<1x64xf32, #tpu.memory_space<vmem>>, %arg4: memref<64x32xf32, #tpu.memory_space<vmem>>, %arg5: memref<1x32xf32, #tpu.memory_space<vmem>>, %arg6: memref<1x32xf32, #tpu.memory_space<vmem>>, %arg7: memref<1x32xf32, #tpu.memory_space<vmem>>, %arg8: memref<16x32xf32, #tpu.memory_space<vmem>>) attributes {dimension_semantics = [#tpu.dimension_semantics<parallel>], iteration_bounds = array<i64: 1>, scalar_prefetch = 0 : i64, scratch_operands = 0 : i64, tpu.core_type = #tpu.core_type<tc>, window_params = [{transform_indices = @transform_0, window_bounds = array<i64: 16, 32>}, {pipeline_mode = #tpu.pipeline_mode<synchronous>, transform_indices = @transform_1, window_bounds = array<i64: 32, 64>}, {pipeline_mode = #tpu.pipeline_mode<synchronous>, transform_indices = @transform_2, window_bounds = array<i64: 1, 64>}, {pipeline_mode = #tpu.pipeline_mode<synchronous>, transform_indices = @transform_3, window_bounds = array<i64: 64, 32>}, {pipeline_mode = #tpu.pipeline_mode<synchronous>, transform_indices = @transform_4, window_bounds = array<i64: 1, 32>}, {pipeline_mode = #tpu.pipeline_mode<synchronous>, transform_indices = @transform_5, window_bounds = array<i64: 1, 32>}, {pipeline_mode = #tpu.pipeline_mode<synchronous>, transform_indices = @transform_6, window_bounds = array<i64: 1, 32>}, {transform_indices = @transform_7, window_bounds = array<i64: 16, 32>}]} {
    %c0 = arith.constant 0 : index
    %c0_0 = arith.constant 0 : index
    %0 = vector.load %arg1[%c0, %c0_0] : memref<16x32xf32, #tpu.memory_space<vmem>>, vector<16x32xf32>
    %c0_1 = arith.constant 0 : index
    %c0_2 = arith.constant 0 : index
    %1 = vector.load %arg2[%c0_1, %c0_2] : memref<32x64xf32, #tpu.memory_space<vmem>>, vector<32x64xf32>
    %cst = arith.constant dense<0.000000e+00> : vector<16x64xf32>
    %2 = tpu.matmul %0, %1, %cst {dimension_numbers = #tpu.dot_dimension_numbers<[1], [0], [0], [1], [0, 0, 1, 1], [], []>} : vector<16x32xf32>, vector<32x64xf32>, vector<16x64xf32> -> vector<16x64xf32>
    %c0_3 = arith.constant 0 : index
    %c0_4 = arith.constant 0 : index
    %3 = vector.load %arg3[%c0_3, %c0_4] : memref<1x64xf32, #tpu.memory_space<vmem>>, vector<1x64xf32>
    %4 = vector.broadcast %3 : vector<1x64xf32> to vector<16x64xf32>
    %5 = arith.addf %2, %4 : vector<16x64xf32>
    %cst_5 = arith.constant 0.000000e+00 : f32
    %6 = vector.broadcast %cst_5 : f32 to vector<16x64xf32>
    %7 = arith.maximumf %5, %6 : vector<16x64xf32>
    %c0_6 = arith.constant 0 : index
    %c0_7 = arith.constant 0 : index
    %8 = vector.load %arg4[%c0_6, %c0_7] : memref<64x32xf32, #tpu.memory_space<vmem>>, vector<64x32xf32>
    %cst_8 = arith.constant dense<0.000000e+00> : vector<16x32xf32>
    %9 = tpu.matmul %7, %8, %cst_8 {dimension_numbers = #tpu.dot_dimension_numbers<[1], [0], [0], [1], [0, 0, 1, 1], [], []>} : vector<16x64xf32>, vector<64x32xf32>, vector<16x32xf32> -> vector<16x32xf32>
    %c0_9 = arith.constant 0 : index
    %c0_10 = arith.constant 0 : index
    %10 = vector.load %arg5[%c0_9, %c0_10] : memref<1x32xf32, #tpu.memory_space<vmem>>, vector<1x32xf32>
    %11 = vector.broadcast %10 : vector<1x32xf32> to vector<16x32xf32>
    %12 = arith.addf %9, %11 : vector<16x32xf32>
    %13 = arith.addf %12, %0 : vector<16x32xf32>
    %c0_11 = arith.constant 0 : index
    %c0_12 = arith.constant 0 : index
    %14 = vector.load %arg6[%c0_11, %c0_12] : memref<1x32xf32, #tpu.memory_space<vmem>>, vector<1x32xf32>
    %c0_13 = arith.constant 0 : index
    %c0_14 = arith.constant 0 : index
    %15 = vector.load %arg7[%c0_13, %c0_14] : memref<1x32xf32, #tpu.memory_space<vmem>>, vector<1x32xf32>
    %cst_15 = arith.constant dense<0.000000e+00> : vector<16xf32>
    %16 = vector.multi_reduction <add>, %13, %cst_15 [1] : vector<16x32xf32> to vector<16xf32>
    %17 = vector.shape_cast %16 : vector<16xf32> to vector<16x1xf32>
    %cst_16 = arith.constant 3.200000e+01 : f32
    %18 = vector.broadcast %cst_16 : f32 to vector<16x1xf32>
    %19 = arith.divf %17, %18 : vector<16x1xf32>
    %20 = vector.broadcast %19 : vector<16x1xf32> to vector<16x32xf32>
    %21 = arith.subf %13, %20 : vector<16x32xf32>
    %22 = arith.mulf %21, %21 : vector<16x32xf32>
    %cst_17 = arith.constant dense<0.000000e+00> : vector<16xf32>
    %23 = vector.multi_reduction <add>, %22, %cst_17 [1] : vector<16x32xf32> to vector<16xf32>
    %24 = vector.shape_cast %23 : vector<16xf32> to vector<16x1xf32>
    %cst_18 = arith.constant 3.100000e+01 : f32
    %25 = vector.broadcast %cst_18 : f32 to vector<16x1xf32>
    %26 = arith.divf %24, %25 : vector<16x1xf32>
    %27 = math.sqrt %26 : vector<16x1xf32>
    %cst_19 = arith.constant 1.000000e-03 : f32
    %28 = vector.broadcast %cst_19 : f32 to vector<16x1xf32>
    %29 = arith.addf %27, %28 : vector<16x1xf32>
    %30 = vector.broadcast %29 : vector<16x1xf32> to vector<16x32xf32>
    %31 = arith.divf %21, %30 : vector<16x32xf32>
    %32 = vector.broadcast %14 : vector<1x32xf32> to vector<16x32xf32>
    %33 = arith.mulf %31, %32 : vector<16x32xf32>
    %34 = vector.broadcast %15 : vector<1x32xf32> to vector<16x32xf32>
    %35 = arith.addf %33, %34 : vector<16x32xf32>
    %c0_20 = arith.constant 0 : index
    %c0_21 = arith.constant 0 : index
    %36 = vector.load %arg8[%c0_20, %c0_21] : memref<16x32xf32, #tpu.memory_space<vmem>>, vector<16x32xf32>
    tpu.vector_store %arg8[%c0_20, %c0_21], %35 {strides = array<i32>} : memref<16x32xf32, #tpu.memory_space<vmem>>, vector<16x32xf32>,
    return
  }
  func.func @transform_0(%arg0: i32) -> (i32, i32) {
    %c0_i32 = arith.constant 0 : i32
    %c0_i32_0 = arith.constant 0 : i32
    return %arg0, %c0_i32 : i32, i32
  }
  func.func @transform_1(%arg0: i32) -> (i32, i32) {
    %c0_i32 = arith.constant 0 : i32
    %c0_i32_0 = arith.constant 0 : i32
    %c0_i32_1 = arith.constant 0 : i32
    return %c0_i32, %c0_i32_0 : i32, i32
  }
  func.func @transform_2(%arg0: i32) -> (i32, i32) {
    %c0_i32 = arith.constant 0 : i32
    %c0_i32_0 = arith.constant 0 : i32
    %c0_i32_1 = arith.constant 0 : i32
    return %c0_i32, %c0_i32_0 : i32, i32
  }
  func.func @transform_3(%arg0: i32) -> (i32, i32) {
    %c0_i32 = arith.constant 0 : i32
    %c0_i32_0 = arith.constant 0 : i32
    %c0_i32_1 = arith.constant 0 : i32
    return %c0_i32, %c0_i32_0 : i32, i32
  }
  func.func @transform_4(%arg0: i32) -> (i32, i32) {
    %c0_i32 = arith.constant 0 : i32
    %c0_i32_0 = arith.constant 0 : i32
    %c0_i32_1 = arith.constant 0 : i32
    return %c0_i32, %c0_i32_0 : i32, i32
  }
  func.func @transform_5(%arg0: i32) -> (i32, i32) {
    %c0_i32 = arith.constant 0 : i32
    %c0_i32_0 = arith.constant 0 : i32
    %c0_i32_1 = arith.constant 0 : i32
    return %c0_i32, %c0_i32_0 : i32, i32
  }
  func.func @transform_6(%arg0: i32) -> (i32, i32) {
    %c0_i32 = arith.constant 0 : i32
    %c0_i32_0 = arith.constant 0 : i32
    %c0_i32_1 = arith.constant 0 : i32
    return %c0_i32, %c0_i32_0 : i32, i32
  }
  func.func @transform_7(%arg0: i32) -> (i32, i32) {
    %c0_i32 = arith.constant 0 : i32
    %c0_i32_0 = arith.constant 0 : i32
    return %arg0, %c0_i32 : i32, i32
  }
}

module attributes {stable_mosaic.version = 11 : i64} {
  func.func @_ffn_kernel_resident(%arg0: i32, %arg1: memref<16x32xf32, #tpu.memory_space<vmem>>, %arg2: memref<32x64xf32, #tpu.memory_space<vmem>>, %arg3: memref<1x64xf32, #tpu.memory_space<vmem>>, %arg4: memref<64x32xf32, #tpu.memory_space<vmem>>, %arg5: memref<1x32xf32, #tpu.memory_space<vmem>>, %arg6: memref<1x32xf32, #tpu.memory_space<vmem>>, %arg7: memref<1x32xf32, #tpu.memory_space<vmem>>, %arg8: memref<16x32xf32, #tpu.memory_space<vmem>>) attributes {dimension_semantics = [#tpu.dimension_semantics<parallel>], iteration_bounds = array<i64: 1>, scalar_prefetch = 0 : i64, scratch_operands = 0 : i64, tpu.core_type = #tpu.core_type<tc>, window_params = [{transform_indices = @transform_0, window_bounds = array<i64: 16, 32>}, {pipeline_mode = #tpu.pipeline_mode<synchronous>, transform_indices = @transform_1, window_bounds = array<i64: 32, 64>}, {pipeline_mode = #tpu.pipeline_mode<synchronous>, transform_indices = @transform_2, window_bounds = array<i64: 1, 64>}, {pipeline_mode = #tpu.pipeline_mode<synchronous>, transform_indices = @transform_3, window_bounds = array<i64: 64, 32>}, {pipeline_mode = #tpu.pipeline_mode<synchronous>, transform_indices = @transform_4, window_bounds = array<i64: 1, 32>}, {pipeline_mode = #tpu.pipeline_mode<synchronous>, transform_indices = @transform_5, window_bounds = array<i64: 1, 32>}, {pipeline_mode = #tpu.pipeline_mode<synchronous>, transform_indices = @transform_6, window_bounds = array<i64: 1, 32>}, {transform_indices = @transform_7, window_bounds = array<i64: 16, 32>}]} {
    %c0 = arith.constant 0 : index
    %c0_0 = arith.constant 0 : index
    %0 = vector.load %arg1[%c0, %c0_0] : memref<16x32xf32, #tpu.memory_space<vmem>>, vector<16x32xf32>
    %c0_1 = arith.constant 0 : index
    %c0_2 = arith.constant 0 : index
    %1 = vector.load %arg2[%c0_1, %c0_2] : memref<32x64xf32, #tpu.memory_space<vmem>>, vector<32x64xf32>
    %cst = arith.constant dense<0.000000e+00> : vector<16x64xf32>
    %2 = tpu.matmul %0, %1, %cst {dimension_numbers = #tpu.dot_dimension_numbers<[1], [0], [0], [1], [0, 0, 1, 1], [], []>} : vector<16x32xf32>, vector<32x64xf32>, vector<16x64xf32> -> vector<16x64xf32>
    %c0_3 = arith.constant 0 : index
    %c0_4 = arith.constant 0 : index
    %3 = vector.load %arg3[%c0_3, %c0_4] : memref<1x64xf32, #tpu.memory_space<vmem>>, vector<1x64xf32>
    %4 = vector.broadcast %3 : vector<1x64xf32> to vector<16x64xf32>
    %5 = arith.addf %2, %4 : vector<16x64xf32>
    %cst_5 = arith.constant 0.000000e+00 : f32
    %6 = vector.broadcast %cst_5 : f32 to vector<16x64xf32>
    %7 = arith.maximumf %5, %6 : vector<16x64xf32>
    %c0_6 = arith.constant 0 : index
    %c0_7 = arith.constant 0 : index
    %8 = vector.load %arg4[%c0_6, %c0_7] : memref<64x32xf32, #tpu.memory_space<vmem>>, vector<64x32xf32>
    %cst_8 = arith.constant dense<0.000000e+00> : vector<16x32xf32>
    %9 = tpu.matmul %7, %8, %cst_8 {dimension_numbers = #tpu.dot_dimension_numbers<[1], [0], [0], [1], [0, 0, 1, 1], [], []>} : vector<16x64xf32>, vector<64x32xf32>, vector<16x32xf32> -> vector<16x32xf32>
    %c0_9 = arith.constant 0 : index
    %c0_10 = arith.constant 0 : index
    %10 = vector.load %arg5[%c0_9, %c0_10] : memref<1x32xf32, #tpu.memory_space<vmem>>, vector<1x32xf32>
    %11 = vector.broadcast %10 : vector<1x32xf32> to vector<16x32xf32>
    %12 = arith.addf %9, %11 : vector<16x32xf32>
    %13 = arith.addf %12, %0 : vector<16x32xf32>
    %c0_11 = arith.constant 0 : index
    %c0_12 = arith.constant 0 : index
    %14 = vector.load %arg6[%c0_11, %c0_12] : memref<1x32xf32, #tpu.memory_space<vmem>>, vector<1x32xf32>
    %c0_13 = arith.constant 0 : index
    %c0_14 = arith.constant 0 : index
    %15 = vector.load %arg7[%c0_13, %c0_14] : memref<1x32xf32, #tpu.memory_space<vmem>>, vector<1x32xf32>
    %cst_15 = arith.constant dense<0.000000e+00> : vector<16xf32>
    %16 = vector.multi_reduction <add>, %13, %cst_15 [1] : vector<16x32xf32> to vector<16xf32>
    %17 = vector.shape_cast %16 : vector<16xf32> to vector<16x1xf32>
    %cst_16 = arith.constant 3.200000e+01 : f32
    %18 = vector.broadcast %cst_16 : f32 to vector<16x1xf32>
    %19 = arith.divf %17, %18 : vector<16x1xf32>
    %20 = vector.broadcast %19 : vector<16x1xf32> to vector<16x32xf32>
    %21 = arith.subf %13, %20 : vector<16x32xf32>
    %22 = arith.mulf %21, %21 : vector<16x32xf32>
    %cst_17 = arith.constant dense<0.000000e+00> : vector<16xf32>
    %23 = vector.multi_reduction <add>, %22, %cst_17 [1] : vector<16x32xf32> to vector<16xf32>
    %24 = vector.shape_cast %23 : vector<16xf32> to vector<16x1xf32>
    %cst_18 = arith.constant 3.100000e+01 : f32
    %25 = vector.broadcast %cst_18 : f32 to vector<16x1xf32>
    %26 = arith.divf %24, %25 : vector<16x1xf32>
    %27 = math.sqrt %26 : vector<16x1xf32>
    %cst_19 = arith.constant 1.000000e-03 : f32
    %28 = vector.broadcast %cst_19 : f32 to vector<16x1xf32>
    %29 = arith.addf %27, %28 : vector<16x1xf32>
    %30 = vector.broadcast %29 : vector<16x1xf32> to vector<16x32xf32>
    %31 = arith.divf %21, %30 : vector<16x32xf32>
    %32 = vector.broadcast %14 : vector<1x32xf32> to vector<16x32xf32>
    %33 = arith.mulf %31, %32 : vector<16x32xf32>
    %34 = vector.broadcast %15 : vector<1x32xf32> to vector<16x32xf32>
    %35 = arith.addf %33, %34 : vector<16x32xf32>
    %c0_20 = arith.constant 0 : index
    %c0_21 = arith.constant 0 : index
    %36 = vector.load %arg8[%c0_20, %c0_21] : memref<16x32xf32, #tpu.memory_space<vmem>>, vector<16x32xf32>
    tpu.vector_store %arg8[%c0_20, %c0_21], %35 {strides = array<i32>} : memref<16x32xf32, #tpu.memory_space<vmem>>, vector<16x32xf32>,
    return
  }
  func.func @transform_0(%arg0: i32) -> (i32, i32) {
    %c0_i32 = arith.constant 0 : i32
    %c0_i32_0 = arith.constant 0 : i32
    return %arg0, %c0_i32 : i32, i32
  }
  func.func @transform_1(%arg0: i32) -> (i32, i32) {
    %c0_i32 = arith.constant 0 : i32
    %c0_i32_0 = arith.constant 0 : i32
    %c0_i32_1 = arith.constant 0 : i32
    return %c0_i32, %c0_i32_0 : i32, i32
  }
  func.func @transform_2(%arg0: i32) -> (i32, i32) {
    %c0_i32 = arith.constant 0 : i32
    %c0_i32_0 = arith.constant 0 : i32
    %c0_i32_1 = arith.constant 0 : i32
    return %c0_i32, %c0_i32_0 : i32, i32
  }
  func.func @transform_3(%arg0: i32) -> (i32, i32) {
    %c0_i32 = arith.constant 0 : i32
    %c0_i32_0 = arith.constant 0 : i32
    %c0_i32_1 = arith.constant 0 : i32
    return %c0_i32, %c0_i32_0 : i32, i32
  }
  func.func @transform_4(%arg0: i32) -> (i32, i32) {
    %c0_i32 = arith.constant 0 : i32
    %c0_i32_0 = arith.constant 0 : i32
    %c0_i32_1 = arith.constant 0 : i32
    return %c0_i32, %c0_i32_0 : i32, i32
  }
  func.func @transform_5(%arg0: i32) -> (i32, i32) {
    %c0_i32 = arith.constant 0 : i32
    %c0_i32_0 = arith.constant 0 : i32
    %c0_i32_1 = arith.constant 0 : i32
    return %c0_i32, %c0_i32_0 : i32, i32
  }
  func.func @transform_6(%arg0: i32) -> (i32, i32) {
    %c0_i32 = arith.constant 0 : i32
    %c0_i32_0 = arith.constant 0 : i32
    %c0_i32_1 = arith.constant 0 : i32
    return %c0_i32, %c0_i32_0 : i32, i32
  }
  func.func @transform_7(%arg0: i32) -> (i32, i32) {
    %c0_i32 = arith.constant 0 : i32
    %c0_i32_0 = arith.constant 0 : i32
    return %arg0, %c0_i32 : i32, i32
  }
}

</mosaic_0001>

<bundles_post_ra>
// kernel: tpu_custom_call.1
= control target key start
LH: loop header
LB: loop body
LE: loop exit
PB: predicated region body
PF: predicated region fallthrough
CT: control target
= control target key end

     0   :  { %vm40_vm0 = vcmask 261120   ;;  %s531_s0 = inlined_call_operand.vmem [shape: f32[16,32], index: 0, kind: input, shape index: {}]   ;;  %s532_s1 = inlined_call_operand.vmem [shape: f32[32,64], index: 1, kind: input, shape index: {}]   ;;  %s533_s2 = inlined_call_operand.vmem [shape: f32[1,64], index: 2, kind: input, shape index: {}]   ;;  %s534_s3 = inlined_call_operand.vmem [shape: f32[64,32], index: 3, kind: input, shape index: {}]   ;;  %s535_s4 = inlined_call_operand.vmem [shape: f32[1,32], index: 4, kind: input, shape index: {}]   ;;  %s536_s5 = inlined_call_operand.vmem [shape: f32[1,32], index: 5, kind: input, shape index: {}]   ;;  %s537_s6 = inlined_call_operand.vmem [shape: f32[1,32], index: 6, kind: input, shape index: {}]   ;;  %s538_s7 = inlined_call_operand.hbm [shape: f32[16,32], index: 7, kind: output, shape index: {}]  }
   0x1   :  { %v29_v0 = vld [vmem:[%s532_s1] sm:$0xff]  ;;  %v30_v1 = vld [vmem:[%s532_s1 + $0x8] sm:$0xff]  ;;  %v31_v2 = vld [vmem:[%s532_s1 + $0x10] sm:$0xff] }
   0x2   :  { %v355_v3 = vpack.c.bf16 %v30_v1, %v29_v0  ;;  %v32_v4 = vld [vmem:[%s532_s1 + $0x18] sm:$0xff]  ;;  %v27_v5 = vld [vmem:[%s531_s0] sm:$0xff]  ;;  %v125_v8 = vld [vmem:[%s534_s3 + $0x8] sm:$0xff] }
   0x3   :  { %v359_v6 = vpack.c.bf16 %v32_v4, %v31_v2  ;;  %333 = vmatprep.mubr.msk.f32.mxu0 %vm40_vm0, %v27_v5  ;;  %v124_v7 = vld [vmem:[%s534_s3] sm:$0xff]  ;;  %v126_v9 = vld [vmem:[%s534_s3 + $0x10] sm:$0xff]  ;;  %v127_v11 = vld [vmem:[%s534_s3 + $0x18] sm:$0xff] }
   0x4   :  { %356 = vmatprep.subr.bf16.mxu0 %v355_v3  ;;  %v363_v10 = vpack.c.bf16 %v125_v8, %v124_v7  ;;  %v367_v12 = vpack.c.bf16 %v127_v11, %v126_v9  ;;  %v128_v13 = vld [vmem:[%s534_s3 + $0x20] sm:$0xff]  ;;  %v129_v14 = vld [vmem:[%s534_s3 + $0x28] sm:$0xff] }
   0x5   :  { %358 = vmatpush3.bf16.msra.mxu0 %v355_v3 }
   0x6   :  { %12 = vsyncpa [#allocation3], 0  ;;  %360 = vmatprep.subr.bf16.mxu0 %v359_v6  ;;  %364 = vmatprep.subr.bf16.mxu1 %v363_v10  ;;  %v371_v15 = vpack.c.bf16 %v129_v14, %v128_v13  ;;  %v28_v16 = vld [vmem:[%s531_s0 + $0x8] sm:$0xff]  ;;  %v130_v17 = vld [vmem:[%s534_s3 + $0x30] sm:$0xff]  ;;  %vm139_vm1 = vcmask 523264   ;;  %s414_s9 = smov [#allocation2]  }
   0x7   :  { %366 = vmatpush3.bf16.msra.mxu1 %v363_v10  ;;  %v131_v18 = vld [vmem:[%s534_s3 + $0x38] sm:$0xff]  ;;  %v301_v20 = vld [vmem:[%s533_s2] ss:$0 sm:$0xff]  ;;  %s290_s10 = sshll.u32 %s414_s9, 4  ;;  %s291_s10 = int_to_ptr.vmem [resolvable:$true] %s290_s10 }
   0x8   :  { %368 = vmatprep.subr.bf16.mxu1 %v367_v12  ;;  %v375_v19 = vpack.c.bf16 %v131_v18, %v130_v17  ;;  %v304_v27 = vld [vmem:[%s535_s4] ss:$0 sm:$0xff]  ;;  %s390_s11 = scalar_lea.vmem %s291_s10, 256  ;;  %p395_p1 = scmp.lt.s32.totalorder %s291_s10, %s291_s10 }
   0x9   :  { %362 = vmatpush3.bf16.msra.mxu0 %v359_v6  ;;  %v307_v63 = vld [vmem:[%s536_s5] ss:$0 sm:$0xff]  ;;  %p391_p0 = scmp.ne.s32.totalorder %s291_s10, %s390_s11  ;;  %p396_p2 = scmp.lt.s32.totalorder %s390_s11, %s390_s11 }
   0xa   :  { %v308_v1 = vld [vmem:[%s537_s6] ss:$0 sm:$0xff] }
   0xb   :  { %370 = vmatpush3.bf16.msra.mxu1 %v367_v12  ;;  %p397_p3 = por %p396_p2, %p395_p1 }
   0xc   :  { %334 = vmatmul.mubr.msk.f32.vlgmr.msra.gmra.mrb[0].mxu0 %vm40_vm0, %v28_v16  ;;  %372 = vmatprep.subr.bf16.mxu1 %v371_v15 }
   0xd   :  { %p398_p4 = pnand %p397_p3, %p391_p0 }
   0xf   :  { %374 = vmatpush3.bf16.msra.mxu1 %v371_v15 }
  0x10   :  { %376 = vmatprep.subr.bf16.mxu1 %v375_v19 }
  0x13   :  { %378 = vmatpush3.bf16.msra.mxu1 %v375_v19 }
  0xdf   :  { %v335_v21 = vpop.f32.mrb[0].mxu0 }
  0xe0   :  { %v119_v22 = vadd.f32 %v335_v21, %v301_v20  ;;  %v113_v23 = vpop.f32.mrb[1].mxu0 }
  0xe1   :  { %v114_v24 = vadd.f32 %v301_v20, %v113_v23 }
  0xe2   :  { %v123_v26 = vmax.f32 %v119_v22, 0.0 }
  0xe3   :  { %v122_v25 = vmax.f32 %v114_v24, 0.0 }
  0xe5   :  { %352 = vmatprep.mubr.msk.f32.mxu1 %vm139_vm1, %v122_v25 }
  0xe6   :  { %353 = vmatmul.mubr.msk.f32.vlgmr.msra.gmra.mrb[0].mxu1 %vm139_vm1, %v123_v26 }
 0x1b9   :  { %v354_v28 = vpop.f32.mrb[0].mxu1 }
 0x1ba   :  { %v212_v29 = vpop.f32.mrb[1].mxu1  ;;  %v218_v30 = vadd.f32 %v354_v28, %v304_v27 }
 0x1bb   :  { %v213_v31 = vadd.f32 %v304_v27, %v212_v29 }
 0x1bc   :  { %v222_v34 = vadd.f32 %v218_v30, %v28_v16 }
 0x1bd   :  { %v221_v32 = vadd.f32 %v213_v31, %v27_v5 }
 0x1be   :  { %v228_v35 = vsel %vm40_vm0, %v222_v34, 0.0 }
 0x1bf   :  { %v225_v33 = vsel %vm40_vm0, %v221_v32, 0.0 }
 0x1c0   :  { %226 = vadd.xlane.f32.xlu0 %v225_v33 }
 0x1c4   :  { %229 = vadd.xlane.f32.xlu0 %v228_v35 }
 0x24d   :  { %v227_v36 = vpop.xlane.xlu0 %226 }
 0x24e   :  { %v232_v37 = vmul.f32 0.03125, %v227_v36 }
 0x250   :  { %v234_v38 = vsub.f32 %v221_v32, %v232_v37 }
 0x251   :  { %v230_v39 = vpop.xlane.xlu0 %229 }
 0x252   :  { %v233_v40 = vmul.f32 0.03125, %v230_v39  ;;  %v236_v41 = vmul.f32 %v234_v38, %v234_v38 }
 0x254   :  { %v235_v42 = vsub.f32 %v222_v34, %v233_v40  ;;  %v238_v43 = vsel %vm40_vm0, %v236_v41, 0.0 }
 0x255   :  { %239 = vadd.xlane.f32.xlu1 %v238_v43 }
 0x256   :  { %v237_v44 = vmul.f32 %v235_v42, %v235_v42 }
 0x258   :  { %v241_v45 = vsel %vm40_vm0, %v237_v44, 0.0 }
 0x259   :  { %242 = vadd.xlane.f32.xlu1 %v241_v45 }
 0x2e2   :  { %v240_v46 = vpop.xlane.xlu1 %239 }
 0x2e3   :  { %v245_v47 = vmul.f32 0.032258064, %v240_v46 }
 0x2e5   :  { %382 = vrsqrt.f32 %v245_v47  ;;  %vm249_vm2 = vcmp.eq.f32.partialorder %v245_v47, inf  ;;  %v252_v52 = vand.u32 2147483648, %v245_v47  ;;  %vm251_vm3 = vcmp.eq.f32.partialorder %v245_v47, 0.0 }
 0x2e6   :  { %v243_v48 = vpop.xlane.xlu1 %242 }
 0x2e7   :  { %v246_v49 = vmul.f32 0.032258064, %v243_v48 }
 0x2e9   :  { %384 = vrsqrt.f32 %v246_v49  ;;  %vm256_vm4 = vcmp.eq.f32.partialorder %v246_v49, inf  ;;  %v259_v58 = vand.u32 2147483648, %v246_v49  ;;  %vm258_vm5 = vcmp.eq.f32.partialorder %v246_v49, 0.0 }
 0x2ef   :  { %v383_v50 = vpop.eup %382 }
 0x2f0   :  { %v248_v51 = vmul.f32 %v383_v50, %v245_v47 }
 0x2f2   :  { %v250_v53 = vsel %vm249_vm2, %v245_v47, %v248_v51 }
 0x2f3   :  { %v385_v54 = vpop.eup %384  ;;  %v253_v55 = vsel %vm251_vm3, %v252_v52, %v250_v53 }
 0x2f4   :  { %v261_v56 = vadd.f32 0.001, %v253_v55  ;;  %v255_v57 = vmul.f32 %v385_v54, %v246_v49 }
 0x2f6   :  { %386 = vrcp.f32 %v261_v56  ;;  %v257_v59 = vsel %vm256_vm4, %v246_v49, %v255_v57 }
 0x2f7   :  { %v260_v60 = vsel %vm258_vm5, %v259_v58, %v257_v59 }
 0x2f8   :  { %v262_v61 = vadd.f32 0.001, %v260_v60 }
 0x2fa   :  { %388 = vrcp.f32 %v262_v61 }
 0x300   :  { %v387_v62 = vpop.eup %386 }
 0x301   :  { %v264_v0 = vmul.f32 %v387_v62, %v234_v38 }
 0x303   :  { %v273_v2 = vmul.f32 %v307_v63, %v264_v0 }
 0x304   :  { %v389_v3 = vpop.eup %388 }
 0x305   :  { %v266_v4 = vmul.f32 %v389_v3, %v235_v42  ;;  %v281_v5 = vadd.f32 %v308_v1, %v273_v2 }
 0x307   :  { %v274_v6 = vmul.f32 %v307_v63, %v266_v4  ;;  %283 = vst.msk [vmem:[#allocation2] sm:$0xff] %vm40_vm0, %v281_v5 }
 0x309   :  { %v282_v7 = vadd.f32 %v308_v1, %v274_v6 }
 0x30b   :  { %284 = vst.msk [vmem:[#allocation2 + $0x8] sm:$0xff] %vm40_vm0, %v282_v7 }
 0x30c   :  { %401 = shalt.err (!%p398_p4)
}
 0x30d   :  { %s402_s12 = scalar_lea.hbm %s538_s7, 256 }
 0x30e   :  { %p403_p5 = scmp.ne.s32.totalorder %s538_s7, %s402_s12  ;;  %p406_p6 = scmp.lt.u32.totalorder %s402_s12, %s538_s7 }
 0x310   :  { %p408_p7 = pnand %p406_p6, %p403_p5 }
 0x312   :  { %411 = shalt.err (!%p408_p7)
}
 0x313   :  { %s415_s1 = smov 128   ;;  %s416_s17 = smov 8  }
 0x314   :  { %296 = dma.vmem_to_hbm [thread:$0]  %s291_s10, 256, %s538_s7, [#allocation3], %s415_s1, %s415_s1, %s416_s17  }
 0x315   :  { %412 = dma.done.wait [#allocation3], 256  }
 0x316   :  { %413 = vsyncadd [#allocation3], 4294967040 }
 0x317   :  { %300 = vsyncpa [#allocation3], 1 }

// kernel: tpu_custom_call.1
= control target key start
LH: loop header
LB: loop body
LE: loop exit
PB: predicated region body
PF: predicated region fallthrough
CT: control target
= control target key end

     0   :  { %vm40_vm0 = vcmask 261120   ;;  %s531_s0 = inlined_call_operand.vmem [shape: f32[16,32], index: 0, kind: input, shape index: {}]   ;;  %s532_s1 = inlined_call_operand.vmem [shape: f32[32,64], index: 1, kind: input, shape index: {}]   ;;  %s533_s2 = inlined_call_operand.vmem [shape: f32[1,64], index: 2, kind: input, shape index: {}]   ;;  %s534_s3 = inlined_call_operand.vmem [shape: f32[64,32], index: 3, kind: input, shape index: {}]   ;;  %s535_s4 = inlined_call_operand.vmem [shape: f32[1,32], index: 4, kind: input, shape index: {}]   ;;  %s536_s5 = inlined_call_operand.vmem [shape: f32[1,32], index: 5, kind: input, shape index: {}]   ;;  %s537_s6 = inlined_call_operand.vmem [shape: f32[1,32], index: 6, kind: input, shape index: {}]   ;;  %s538_s7 = inlined_call_operand.hbm [shape: f32[16,32], index: 7, kind: output, shape index: {}]  }
   0x1   :  { %v29_v0 = vld [vmem:[%s532_s1] sm:$0xff]  ;;  %v30_v1 = vld [vmem:[%s532_s1 + $0x8] sm:$0xff]  ;;  %v31_v2 = vld [vmem:[%s532_s1 + $0x10] sm:$0xff] }
   0x2   :  { %v355_v3 = vpack.c.bf16 %v30_v1, %v29_v0  ;;  %v32_v4 = vld [vmem:[%s532_s1 + $0x18] sm:$0xff]  ;;  %v27_v5 = vld [vmem:[%s531_s0] sm:$0xff]  ;;  %v125_v8 = vld [vmem:[%s534_s3 + $0x8] sm:$0xff] }
   0x3   :  { %v359_v6 = vpack.c.bf16 %v32_v4, %v31_v2  ;;  %333 = vmatprep.mubr.msk.f32.mxu0 %vm40_vm0, %v27_v5  ;;  %v124_v7 = vld [vmem:[%s534_s3] sm:$0xff]  ;;  %v126_v9 = vld [vmem:[%s534_s3 + $0x10] sm:$0xff]  ;;  %v127_v11 = vld [vmem:[%s534_s3 + $0x18] sm:$0xff] }
   0x4   :  { %356 = vmatprep.subr.bf16.mxu0 %v355_v3  ;;  %v363_v10 = vpack.c.bf16 %v125_v8, %v124_v7  ;;  %v367_v12 = vpack.c.bf16 %v127_v11, %v126_v9  ;;  %v128_v13 = vld [vmem:[%s534_s3 + $0x20] sm:$0xff]  ;;  %v129_v14 = vld [vmem:[%s534_s3 + $0x28] sm:$0xff] }
   0x5   :  { %358 = vmatpush3.bf16.msra.mxu0 %v355_v3 }
   0x6   :  { %12 = vsyncpa [#allocation3], 0  ;;  %360 = vmatprep.subr.bf16.mxu0 %v359_v6  ;;  %364 = vmatprep.subr.bf16.mxu1 %v363_v10  ;;  %v371_v15 = vpack.c.bf16 %v129_v14, %v128_v13  ;;  %v28_v16 = vld [vmem:[%s531_s0 + $0x8] sm:$0xff]  ;;  %v130_v17 = vld [vmem:[%s534_s3 + $0x30] sm:$0xff]  ;;  %vm139_vm1 = vcmask 523264   ;;  %s414_s9 = smov [#allocation2]  }
   0x7   :  { %366 = vmatpush3.bf16.msra.mxu1 %v363_v10  ;;  %v131_v18 = vld [vmem:[%s534_s3 + $0x38] sm:$0xff]  ;;  %v301_v20 = vld [vmem:[%s533_s2] ss:$0 sm:$0xff]  ;;  %s290_s10 = sshll.u32 %s414_s9, 4  ;;  %s291_s10 = int_to_ptr.vmem [resolvable:$true] %s290_s10 }
   0x8   :  { %368 = vmatprep.subr.bf16.mxu1 %v367_v12  ;;  %v375_v19 = vpack.c.bf16 %v131_v18, %v130_v17  ;;  %v304_v27 = vld [vmem:[%s535_s4] ss:$0 sm:$0xff]  ;;  %s390_s11 = scalar_lea.vmem %s291_s10, 256  ;;  %p395_p1 = scmp.lt.s32.totalorder %s291_s10, %s291_s10 }
   0x9   :  { %362 = vmatpush3.bf16.msra.mxu0 %v359_v6  ;;  %v307_v63 = vld [vmem:[%s536_s5] ss:$0 sm:$0xff]  ;;  %p391_p0 = scmp.ne.s32.totalorder %s291_s10, %s390_s11  ;;  %p396_p2 = scmp.lt.s32.totalorder %s390_s11, %s390_s11 }
   0xa   :  { %v308_v1 = vld [vmem:[%s537_s6] ss:$0 sm:$0xff] }
   0xb   :  { %370 = vmatpush3.bf16.msra.mxu1 %v367_v12  ;;  %p397_p3 = por %p396_p2, %p395_p1 }
   0xc   :  { %334 = vmatmul.mubr.msk.f32.vlgmr.msra.gmra.mrb[0].mxu0 %vm40_vm0, %v28_v16  ;;  %372 = vmatprep.subr.bf16.mxu1 %v371_v15 }
   0xd   :  { %p398_p4 = pnand %p397_p3, %p391_p0 }
   0xf   :  { %374 = vmatpush3.bf16.msra.mxu1 %v371_v15 }
  0x10   :  { %376 = vmatprep.subr.bf16.mxu1 %v375_v19 }
  0x13   :  { %378 = vmatpush3.bf16.msra.mxu1 %v375_v19 }
  0xdf   :  { %v335_v21 = vpop.f32.mrb[0].mxu0 }
  0xe0   :  { %v119_v22 = vadd.f32 %v335_v21, %v301_v20  ;;  %v113_v23 = vpop.f32.mrb[1].mxu0 }
  0xe1   :  { %v114_v24 = vadd.f32 %v301_v20, %v113_v23 }
  0xe2   :  { %v123_v26 = vmax.f32 %v119_v22, 0.0 }
  0xe3   :  { %v122_v25 = vmax.f32 %v114_v24, 0.0 }
  0xe5   :  { %352 = vmatprep.mubr.msk.f32.mxu1 %vm139_vm1, %v122_v25 }
  0xe6   :  { %353 = vmatmul.mubr.msk.f32.vlgmr.msra.gmra.mrb[0].mxu1 %vm139_vm1, %v123_v26 }
 0x1b9   :  { %v354_v28 = vpop.f32.mrb[0].mxu1 }
 0x1ba   :  { %v212_v29 = vpop.f32.mrb[1].mxu1  ;;  %v218_v30 = vadd.f32 %v354_v28, %v304_v27 }
 0x1bb   :  { %v213_v31 = vadd.f32 %v304_v27, %v212_v29 }
 0x1bc   :  { %v222_v34 = vadd.f32 %v218_v30, %v28_v16 }
 0x1bd   :  { %v221_v32 = vadd.f32 %v213_v31, %v27_v5 }
 0x1be   :  { %v228_v35 = vsel %vm40_vm0, %v222_v34, 0.0 }
 0x1bf   :  { %v225_v33 = vsel %vm40_vm0, %v221_v32, 0.0 }
 0x1c0   :  { %226 = vadd.xlane.f32.xlu0 %v225_v33 }
 0x1c4   :  { %229 = vadd.xlane.f32.xlu0 %v228_v35 }
 0x24d   :  { %v227_v36 = vpop.xlane.xlu0 %226 }
 0x24e   :  { %v232_v37 = vmul.f32 0.03125, %v227_v36 }
 0x250   :  { %v234_v38 = vsub.f32 %v221_v32, %v232_v37 }
 0x251   :  { %v230_v39 = vpop.xlane.xlu0 %229 }
 0x252   :  { %v233_v40 = vmul.f32 0.03125, %v230_v39  ;;  %v236_v41 = vmul.f32 %v234_v38, %v234_v38 }
 0x254   :  { %v235_v42 = vsub.f32 %v222_v34, %v233_v40  ;;  %v238_v43 = vsel %vm40_vm0, %v236_v41, 0.0 }
 0x255   :  { %239 = vadd.xlane.f32.xlu1 %v238_v43 }
 0x256   :  { %v237_v44 = vmul.f32 %v235_v42, %v235_v42 }
 0x258   :  { %v241_v45 = vsel %vm40_vm0, %v237_v44, 0.0 }
 0x259   :  { %242 = vadd.xlane.f32.xlu1 %v241_v45 }
 0x2e2   :  { %v240_v46 = vpop.xlane.xlu1 %239 }
 0x2e3   :  { %v245_v47 = vmul.f32 0.032258064, %v240_v46 }
 0x2e5   :  { %382 = vrsqrt.f32 %v245_v47  ;;  %vm249_vm2 = vcmp.eq.f32.partialorder %v245_v47, inf  ;;  %v252_v52 = vand.u32 2147483648, %v245_v47  ;;  %vm251_vm3 = vcmp.eq.f32.partialorder %v245_v47, 0.0 }
 0x2e6   :  { %v243_v48 = vpop.xlane.xlu1 %242 }
 0x2e7   :  { %v246_v49 = vmul.f32 0.032258064, %v243_v48 }
 0x2e9   :  { %384 = vrsqrt.f32 %v246_v49  ;;  %vm256_vm4 = vcmp.eq.f32.partialorder %v246_v49, inf  ;;  %v259_v58 = vand.u32 2147483648, %v246_v49  ;;  %vm258_vm5 = vcmp.eq.f32.partialorder %v246_v49, 0.0 }
 0x2ef   :  { %v383_v50 = vpop.eup %382 }
 0x2f0   :  { %v248_v51 = vmul.f32 %v383_v50, %v245_v47 }
 0x2f2   :  { %v250_v53 = vsel %vm249_vm2, %v245_v47, %v248_v51 }
 0x2f3   :  { %v385_v54 = vpop.eup %384  ;;  %v253_v55 = vsel %vm251_vm3, %v252_v52, %v250_v53 }
 0x2f4   :  { %v261_v56 = vadd.f32 0.001, %v253_v55  ;;  %v255_v57 = vmul.f32 %v385_v54, %v246_v49 }
 0x2f6   :  { %386 = vrcp.f32 %v261_v56  ;;  %v257_v59 = vsel %vm256_vm4, %v246_v49, %v255_v57 }
 0x2f7   :  { %v260_v60 = vsel %vm258_vm5, %v259_v58, %v257_v59 }
 0x2f8   :  { %v262_v61 = vadd.f32 0.001, %v260_v60 }
 0x2fa   :  { %388 = vrcp.f32 %v262_v61 }
 0x300   :  { %v387_v62 = vpop.eup %386 }
 0x301   :  { %v264_v0 = vmul.f32 %v387_v62, %v234_v38 }
 0x303   :  { %v273_v2 = vmul.f32 %v307_v63, %v264_v0 }
 0x304   :  { %v389_v3 = vpop.eup %388 }
 0x305   :  { %v266_v4 = vmul.f32 %v389_v3, %v235_v42  ;;  %v281_v5 = vadd.f32 %v308_v1, %v273_v2 }
 0x307   :  { %v274_v6 = vmul.f32 %v307_v63, %v266_v4  ;;  %283 = vst.msk [vmem:[#allocation2] sm:$0xff] %vm40_vm0, %v281_v5 }
 0x309   :  { %v282_v7 = vadd.f32 %v308_v1, %v274_v6 }
 0x30b   :  { %284 = vst.msk [vmem:[#allocation2 + $0x8] sm:$0xff] %vm40_vm0, %v282_v7 }
 0x30c   :  { %401 = shalt.err (!%p398_p4)
}
 0x30d   :  { %s402_s12 = scalar_lea.hbm %s538_s7, 256 }
 0x30e   :  { %p403_p5 = scmp.ne.s32.totalorder %s538_s7, %s402_s12  ;;  %p406_p6 = scmp.lt.u32.totalorder %s402_s12, %s538_s7 }
 0x310   :  { %p408_p7 = pnand %p406_p6, %p403_p5 }
 0x312   :  { %411 = shalt.err (!%p408_p7)
}
 0x313   :  { %s415_s1 = smov 128   ;;  %s416_s17 = smov 8  }
 0x314   :  { %296 = dma.vmem_to_hbm [thread:$0]  %s291_s10, 256, %s538_s7, [#allocation3], %s415_s1, %s415_s1, %s416_s17  }
 0x315   :  { %412 = dma.done.wait [#allocation3], 256  }
 0x316   :  { %413 = vsyncadd [#allocation3], 4294967040 }
 0x317   :  { %300 = vsyncpa [#allocation3], 1 }

</bundles_post_ra>
